<compile_context>
chip_gen: v6e
topology: v6e:2x2x1
jax: 0.10.0
libtpu: 0.0.40
codegen_flags: <defaults>
</compile_context>

<pallas_src>
import functools

import jax
import jax.numpy as jnp
import numpy as np
from jax.experimental import pallas as pl
from jax.experimental.pallas import tpu as pltpu

_K = 7  # kernel size of the middle ConvB


def _mask_b(kh: int, kw: int) -> np.ndarray:
    """ConvB ('type B') mask: rows above center full, center row up to & incl. center col."""
    m = np.zeros((kh, kw), np.float32)
    m[: kh // 2, :] = 1.0
    m[kh // 2, : kw // 2 + 1] = 1.0
    return m


def _active_taps(K):
    m = _mask_b(K, K)
    return [(kh, kw) for kh in range(K) for kw in range(K) if m[kh, kw] > 0.0]


def _tap_shifts_and_masks(H, W, K):
    """Static flat-pixel shifts + validity masks (ntaps, H*W) for every active ConvB tap."""
    P = K // 2
    n = np.arange(H * W)
    rows, cols = n // W, n % W
    shifts, masks = [], []
    for kh, kw in _active_taps(K):
        shifts.append((kh - P) * W + (kw - P))
        valid = ((rows + kh - P >= 0) & (rows + kh - P < H) &
                 (cols + kw - P >= 0) & (cols + kw - P < W))
        masks.append(valid.astype(np.float32))
    return tuple(shifts), np.stack(masks, axis=0)


def _resblock_kernel(Bb, C, Cm_pad, HW, shifts, eps,
                     x_ref, m_ref, w1_ref, b1_ref, w2_ref, b2_ref,
                     w3_ref, b3_ref, g_ref, beta_ref, o_ref, col_ref):
    # ---- fold the batch block onto the lane axis: (Bb, C, HW) -> (C, Bb*HW) ----
    if Bb == 1:
        xb = x_ref[0]
    else:
        xb = jnp.concatenate([x_ref[b] for b in range(Bb)], axis=1)   # 128-aligned chunks

    # ---- ReLU -> ConvB 1x1 (C -> Cm_pad); bf16 operands, f32 accumulation ----
    h1 = jnp.maximum(xb, 0.0).astype(jnp.bfloat16)                    # (C, N)
    y1 = jnp.dot(w1_ref[...], h1,
                 preferred_element_type=jnp.float32) + b1_ref[...]    # (Cm_pad, N) f32
    h2 = jnp.maximum(y1, 0.0)                                         # (Cm_pad, N) f32

    # ---- ReLU -> ConvB 7x7 as ONE im2col matmul ----
    # each active tap = static roll along the flat pixel/lane axis; write each 8-row
    # (sublane-aligned) chunk into the preallocated VMEM scratch.
    for t, s in enumerate(shifts):
        shifted = h2 if s == 0 else jnp.roll(h2, -s, axis=1)
        col_ref[t * Cm_pad:(t + 1) * Cm_pad, :] = shifted
    # one aligned VPU multiply with the pre-expanded boundary masks, cast to bf16 for MXU
    colb = (col_ref[...] * m_ref[...]).astype(jnp.bfloat16)           # (ntaps*Cm_pad, N)
    y2 = jnp.dot(w2_ref[...], colb,
                 preferred_element_type=jnp.float32) + b2_ref[...]    # (Cm_pad, N) f32

    # ---- ReLU -> ConvB 1x1 (Cm_pad -> C) ----
    h3 = jnp.maximum(y2, 0.0).astype(jnp.bfloat16)
    y3 = jnp.dot(w3_ref[...], h3,
                 preferred_element_type=jnp.float32) + b3_ref[...]    # (C, N) f32

    # ---- residual + LayerNorm over channels (== permute -> LN -> permute), all f32 ----
    res = y3 + xb
    mean = jnp.mean(res, axis=0, keepdims=True)
    cen = res - mean
    var = jnp.mean(cen * cen, axis=0, keepdims=True)
    out = cen * jax.lax.rsqrt(var + eps) * g_ref[...] + beta_ref[...]  # (C, N)

    # ---- unfold lanes back to the (Bb, C, HW) output block (128-aligned lane slices) ----
    if Bb == 1:
        o_ref[0] = out
    else:
        for b in range(Bb):
            o_ref[b] = out[:, b * HW:(b + 1) * HW]


def _pick_batch_block(B, C, HW, ntaps, cm_pad, budget_bytes=20 << 20):
    """Largest Bb that (a) keeps >=2 grid steps (v7x megacore / pipelining) and
    (b) keeps the working set inside a conservative VMEM budget (v5e/v7x safe)."""
    min_grid = 1 if B < 2 else (2 if B < 8 else 4)
    best = 1
    for bb in range(1, B + 1):
        if B % bb:
            continue
        if B // bb < min_grid:
            continue
        n = bb * HW
        fp = (4 * bb * C * HW * 4              # in + out blocks, double-buffered, f32
              + 2 * ntaps * cm_pad * n * 4     # col scratch (f32) + expanded masks (f32)
              + 8 * cm_pad * n * 4)            # matmul / im2col temporaries
        if fp > budget_bytes:
            continue
        best = bb
    return best


def resblock_cnn(x_nchw, params, eps=1e-5):
    B, C, H, W = x_nchw.shape
    Cm = C // 2
    Cm_pad = ((Cm + 7) // 8) * 8               # pad hidden channels to the 8-sublane tile
    HW = H * W
    K = _K
    shifts, masks_np = _tap_shifts_and_masks(H, W, K)
    taps = _active_taps(K)
    ntaps = len(taps)

    Bb = _pick_batch_block(B, C, HW, ntaps, Cm_pad)
    N = Bb * HW

    # ---- parameter layout glue (tiny, one-time): PyTorch OIHW -> matmul-ready, padded ----
    pad_r = Cm_pad - Cm
    w1 = jnp.pad(params["w1"][:, :, 0, 0], ((0, pad_r), (0, 0))).astype(jnp.bfloat16)   # (Cm_pad, C)
    b1 = jnp.pad(params["b1"], (0, pad_r)).reshape(Cm_pad, 1).astype(jnp.float32)
    w2_blocks = []
    for kh, kw in taps:
        blk = jnp.pad(params["w2"][:, :, kh, kw], ((0, pad_r), (0, pad_r)))             # (Cm_pad, Cm_pad)
        w2_blocks.append(blk)
    w2col = jnp.concatenate(w2_blocks, axis=1).astype(jnp.bfloat16)                     # (Cm_pad, ntaps*Cm_pad)
    b2 = jnp.pad(params["b2"], (0, pad_r)).reshape(Cm_pad, 1).astype(jnp.float32)
    w3 = jnp.pad(params["w3"][:, :, 0, 0], ((0, 0), (0, pad_r))).astype(jnp.bfloat16)   # (C, Cm_pad)
    b3 = params["b3"].reshape(C, 1).astype(jnp.float32)
    gamma = params["gamma"].reshape(C, 1).astype(jnp.float32)
    beta = params["beta"].reshape(C, 1).astype(jnp.float32)

    # tap masks pre-expanded along sublanes (Cm_pad per tap) and tiled along lanes (Bb)
    masks_exp = np.tile(np.repeat(masks_np, Cm_pad, axis=0), (1, Bb))                   # (ntaps*Cm_pad, N)
    masks = jnp.asarray(masks_exp, dtype=jnp.float32)

    # free reshape (no HBM transpose anywhere): NCHW -> (B, C, H*W)
    x = x_nchw.reshape(B, C, HW).astype(jnp.float32)

    # explicit VMEM limit: above the 16/32 MiB scoped defaults, below v7x's 64 MiB physical
    est = (4 * Bb * C * HW * 4 + 2 * ntaps * Cm_pad * N * 4 + 8 * Cm_pad * N * 4)
    vmem_limit = int(min(48 << 20, max(32 << 20, 2 * est)))

    kernel = functools.partial(_resblock_kernel, Bb, C, Cm_pad, HW, shifts, eps)

    out = pl.pallas_call(
        kernel,
        out_shape=jax.ShapeDtypeStruct((B, C, HW), jnp.float32),
        grid_spec=pltpu.PrefetchScalarGridSpec(
            num_scalar_prefetch=0,
            grid=(B // Bb,),
            in_specs=[
                pl.BlockSpec((Bb, C, HW), lambda b: (b, 0, 0)),          # x
                pl.BlockSpec((ntaps * Cm_pad, N), lambda b: (0, 0)),     # expanded tap masks
                pl.BlockSpec((Cm_pad, C), lambda b: (0, 0)),             # w1 (bf16)
                pl.BlockSpec((Cm_pad, 1), lambda b: (0, 0)),             # b1
                pl.BlockSpec((Cm_pad, ntaps * Cm_pad), lambda b: (0, 0)),  # w2 im2col (bf16)
                pl.BlockSpec((Cm_pad, 1), lambda b: (0, 0)),             # b2
                pl.BlockSpec((C, Cm_pad), lambda b: (0, 0)),             # w3 (bf16)
                pl.BlockSpec((C, 1), lambda b: (0, 0)),                  # b3
                pl.BlockSpec((C, 1), lambda b: (0, 0)),                  # gamma
                pl.BlockSpec((C, 1), lambda b: (0, 0)),                  # beta
            ],
            out_specs=pl.BlockSpec((Bb, C, HW), lambda b: (b, 0, 0)),
            scratch_shapes=[pltpu.VMEM((ntaps * Cm_pad, N), jnp.float32)],  # im2col col
        ),
        compiler_params=pltpu.CompilerParams(
            dimension_semantics=("parallel",),
            vmem_limit_bytes=vmem_limit),
    )(x, masks, w1, b1, w2col, b2, w3, b3, gamma, beta)

    return out.reshape(B, C, H, W)


def _ref_forward(x_nchw, params, eps=1e-5):
    """Pure-JAX reference of ResBlockCNN.forward for validation."""
    mask = jnp.asarray(_mask_b(_K, _K))
    w2m = params["w2"] * mask[None, None]

    def conv(x, w, b, pad):
        y = jax.lax.conv_general_dilated(
            x, w, window_strides=(1, 1), padding=[(pad, pad), (pad, pad)],
            dimension_numbers=("NCHW", "OIHW", "NCHW"))
        return y + b[None, :, None, None]

    h = jax.nn.relu(x_nchw)
    h = conv(h, params["w1"], params["b1"], 0)
    h = jax.nn.relu(h)
    h = conv(h, w2m, params["b2"], 3)
    h = jax.nn.relu(h)
    h = conv(h, params["w3"], params["b3"], 0)
    res = h + x_nchw
    res = jnp.transpose(res, (0, 2, 3, 1))
    mean = res.mean(-1, keepdims=True)
    var = ((res - mean) ** 2).mean(-1, keepdims=True)
    res = (res - mean) / jnp.sqrt(var + eps) * params["gamma"] + params["beta"]
    return jnp.transpose(res, (0, 3, 1, 2))


if __name__ == "__main__":
    B, C, H, W = 2, 8, 16, 16          # in_c = 8, in_c // 2 = 4
    Cm = C // 2
    key = jax.random.PRNGKey(0)
    ks = jax.random.split(key, 9)

    params = {
        "w1": 0.3 * jax.random.normal(ks[0], (Cm, C, 1, 1), jnp.float32),
        "b1": 0.1 * jax.random.normal(ks[1], (Cm,), jnp.float32),
        "w2": 0.1 * jax.random.normal(ks[2], (Cm, Cm, 7, 7), jnp.float32),
        "b2": 0.1 * jax.random.normal(ks[3], (Cm,), jnp.float32),
        "w3": 0.3 * jax.random.normal(ks[4], (C, Cm, 1, 1), jnp.float32),
        "b3": 0.1 * jax.random.normal(ks[5], (C,), jnp.float32),
        "gamma": 1.0 + 0.1 * jax.random.normal(ks[6], (C,), jnp.float32),
        "beta": 0.1 * jax.random.normal(ks[7], (C,), jnp.float32),
    }
    x = jax.random.normal(ks[8], (B, C, H, W), jnp.float32)

    out = resblock_cnn(x, params)
    out = jax.block_until_ready(out)

    ref = _ref_forward(x, params)
    assert out.shape == (B, C, H, W)
    # bf16 MXU operands with f32 accumulation (residual/LN in f32): ~1e-3 typical error.
    assert jnp.allclose(out, ref, atol=1e-2, rtol=1e-2), "Pallas kernel mismatch vs reference"

    print("KERNEL_OK")
</pallas_src>

<mosaic_0001>
module attributes {stable_mosaic.version = 11 : i64} {
  func.func @_resblock_kernel(%arg0: i32, %arg1: memref<1x8x256xf32, #tpu.memory_space<vmem>>, %arg2: memref<200x256xf32, #tpu.memory_space<vmem>>, %arg3: memref<8x8xbf16, #tpu.memory_space<vmem>>, %arg4: memref<8x1xf32, #tpu.memory_space<vmem>>, %arg5: memref<8x200xbf16, #tpu.memory_space<vmem>>, %arg6: memref<8x1xf32, #tpu.memory_space<vmem>>, %arg7: memref<8x8xbf16, #tpu.memory_space<vmem>>, %arg8: memref<8x1xf32, #tpu.memory_space<vmem>>, %arg9: memref<8x1xf32, #tpu.memory_space<vmem>>, %arg10: memref<8x1xf32, #tpu.memory_space<vmem>>, %arg11: memref<1x8x256xf32, #tpu.memory_space<vmem>>, %arg12: memref<200x256xf32, #tpu.memory_space<vmem>>) attributes {dimension_semantics = [#tpu.dimension_semantics<parallel>], iteration_bounds = array<i64: 2>, scalar_prefetch = 0 : i64, scratch_operands = 1 : i64, tpu.core_type = #tpu.core_type<tc>, window_params = [{transform_indices = @transform_0, window_bounds = array<i64: 1, 8, 256>}, {pipeline_mode = #tpu.pipeline_mode<synchronous>, transform_indices = @transform_1, window_bounds = array<i64: 200, 256>}, {pipeline_mode = #tpu.pipeline_mode<synchronous>, transform_indices = @transform_2, window_bounds = array<i64: 8, 8>}, {pipeline_mode = #tpu.pipeline_mode<synchronous>, transform_indices = @transform_3, window_bounds = array<i64: 8, 1>}, {pipeline_mode = #tpu.pipeline_mode<synchronous>, transform_indices = @transform_4, window_bounds = array<i64: 8, 200>}, {pipeline_mode = #tpu.pipeline_mode<synchronous>, transform_indices = @transform_5, window_bounds = array<i64: 8, 1>}, {pipeline_mode = #tpu.pipeline_mode<synchronous>, transform_indices = @transform_6, window_bounds = array<i64: 8, 8>}, {pipeline_mode = #tpu.pipeline_mode<synchronous>, transform_indices = @transform_7, window_bounds = array<i64: 8, 1>}, {pipeline_mode = #tpu.pipeline_mode<synchronous>, transform_indices = @transform_8, window_bounds = array<i64: 8, 1>}, {pipeline_mode = #tpu.pipeline_mode<synchronous>, transform_indices = @transform_9, window_bounds = array<i64: 8, 1>}, {transform_indices = @transform_10, window_bounds = array<i64: 1, 8, 256>}]} {
    %c0 = arith.constant 0 : index
    %c0_0 = arith.constant 0 : index
    %c0_1 = arith.constant 0 : index
    %0 = vector.load %arg1[%c0, %c0_0, %c0_1] : memref<1x8x256xf32, #tpu.memory_space<vmem>>, vector<1x8x256xf32>
    %1 = vector.shape_cast %0 : vector<1x8x256xf32> to vector<8x256xf32>
    %cst = arith.constant 0.000000e+00 : f32
    %2 = vector.broadcast %cst : f32 to vector<8x256xf32>
    %3 = arith.maximumf %1, %2 : vector<8x256xf32>
    %4 = arith.truncf %3 : vector<8x256xf32> to vector<8x256xbf16>
    %c0_2 = arith.constant 0 : index
    %c0_3 = arith.constant 0 : index
    %5 = vector.load %arg3[%c0_2, %c0_3] : memref<8x8xbf16, #tpu.memory_space<vmem>>, vector<8x8xbf16>
    %cst_4 = arith.constant dense<0.000000e+00> : vector<8x256xf32>
    %6 = tpu.matmul %5, %4, %cst_4 {dimension_numbers = #tpu.dot_dimension_numbers<[1], [0], [0], [1], [0, 0, 1, 1], [], []>} : vector<8x8xbf16>, vector<8x256xbf16>, vector<8x256xf32> -> vector<8x256xf32>
    %c0_5 = arith.constant 0 : index
    %c0_6 = arith.constant 0 : index
    %7 = vector.load %arg4[%c0_5, %c0_6] : memref<8x1xf32, #tpu.memory_space<vmem>>, vector<8x1xf32>
    %8 = vector.broadcast %7 : vector<8x1xf32> to vector<8x256xf32>
    %9 = arith.addf %6, %8 : vector<8x256xf32>
    %cst_7 = arith.constant 0.000000e+00 : f32
    %10 = vector.broadcast %cst_7 : f32 to vector<8x256xf32>
    %11 = arith.maximumf %9, %10 : vector<8x256xf32>
    %12 = vector.extract_strided_slice %11 {offsets = [0, 205], sizes = [8, 51], strides = [1, 1]} : vector<8x256xf32> to vector<8x51xf32>
    %13 = vector.extract_strided_slice %11 {offsets = [0, 0], sizes = [8, 205], strides = [1, 1]} : vector<8x256xf32> to vector<8x205xf32>
    %14 = tpu.concatenate %12, %13 in 1 : vector<8x51xf32>, vector<8x205xf32> -> vector<8x256xf32>
    %c0_8 = arith.constant 0 : index
    %c0_9 = arith.constant 0 : index
    %15 = vector.load %arg12[%c0_8, %c0_9] : memref<200x256xf32, #tpu.memory_space<vmem>>, vector<8x256xf32>
    tpu.vector_store %arg12[%c0_8, %c0_9], %14 {strides = array<i32>} : memref<200x256xf32, #tpu.memory_space<vmem>>, vector<8x256xf32>,
    %16 = vector.extract_strided_slice %11 {offsets = [0, 206], sizes = [8, 50], strides = [1, 1]} : vector<8x256xf32> to vector<8x50xf32>
    %17 = vector.extract_strided_slice %11 {offsets = [0, 0], sizes = [8, 206], strides = [1, 1]} : vector<8x256xf32> to vector<8x206xf32>
    %18 = tpu.concatenate %16, %17 in 1 : vector<8x50xf32>, vector<8x206xf32> -> vector<8x256xf32>
    %c8 = arith.constant 8 : index
    %c0_10 = arith.constant 0 : index
    %19 = vector.load %arg12[%c8, %c0_10] : memref<200x256xf32, #tpu.memory_space<vmem>>, vector<8x256xf32>
    tpu.vector_store %arg12[%c8, %c0_10], %18 {strides = array<i32>} : memref<200x256xf32, #tpu.memory_space<vmem>>, vector<8x256xf32>,
    %20 = vector.extract_strided_slice %11 {offsets = [0, 207], sizes = [8, 49], strides = [1, 1]} : vector<8x256xf32> to vector<8x49xf32>
    %21 = vector.extract_strided_slice %11 {offsets = [0, 0], sizes = [8, 207], strides = [1, 1]} : vector<8x256xf32> to vector<8x207xf32>
    %22 = tpu.concatenate %20, %21 in 1 : vector<8x49xf32>, vector<8x207xf32> -> vector<8x256xf32>
    %c16 = arith.constant 16 : index
    %c0_11 = arith.constant 0 : index
    %23 = vector.load %arg12[%c16, %c0_11] : memref<200x256xf32, #tpu.memory_space<vmem>>, vector<8x256xf32>
    tpu.vector_store %arg12[%c16, %c0_11], %22 {strides = array<i32>} : memref<200x256xf32, #tpu.memory_space<vmem>>, vector<8x256xf32>,
    %24 = vector.extract_strided_slice %11 {offsets = [0, 208], sizes = [8, 48], strides = [1, 1]} : vector<8x256xf32> to vector<8x48xf32>
    %25 = vector.extract_strided_slice %11 {offsets = [0, 0], sizes = [8, 208], strides = [1, 1]} : vector<8x256xf32> to vector<8x208xf32>
    %26 = tpu.concatenate %24, %25 in 1 : vector<8x48xf32>, vector<8x208xf32> -> vector<8x256xf32>
    %c24 = arith.constant 24 : index
    %c0_12 = arith.constant 0 : index
    %27 = vector.load %arg12[%c24, %c0_12] : memref<200x256xf32, #tpu.memory_space<vmem>>, vector<8x256xf32>
    tpu.vector_store %arg12[%c24, %c0_12], %26 {strides = array<i32>} : memref<200x256xf32, #tpu.memory_space<vmem>>, vector<8x256xf32>,
    %28 = vector.extract_strided_slice %11 {offsets = [0, 209], sizes = [8, 47], strides = [1, 1]} : vector<8x256xf32> to vector<8x47xf32>
    %29 = vector.extract_strided_slice %11 {offsets = [0, 0], sizes = [8, 209], strides = [1, 1]} : vector<8x256xf32> to vector<8x209xf32>
    %30 = tpu.concatenate %28, %29 in 1 : vector<8x47xf32>, vector<8x209xf32> -> vector<8x256xf32>
    %c32 = arith.constant 32 : index
    %c0_13 = arith.constant 0 : index
    %31 = vector.load %arg12[%c32, %c0_13] : memref<200x256xf32, #tpu.memory_space<vmem>>, vector<8x256xf32>
    tpu.vector_store %arg12[%c32, %c0_13], %30 {strides = array<i32>} : memref<200x256xf32, #tpu.memory_space<vmem>>, vector<8x256xf32>,
    %32 = vector.extract_strided_slice %11 {offsets = [0, 210], sizes = [8, 46], strides = [1, 1]} : vector<8x256xf32> to vector<8x46xf32>
    %33 = vector.extract_strided_slice %11 {offsets = [0, 0], sizes = [8, 210], strides = [1, 1]} : vector<8x256xf32> to vector<8x210xf32>
    %34 = tpu.concatenate %32, %33 in 1 : vector<8x46xf32>, vector<8x210xf32> -> vector<8x256xf32>
    %c40 = arith.constant 40 : index
    %c0_14 = arith.constant 0 : index
    %35 = vector.load %arg12[%c40, %c0_14] : memref<200x256xf32, #tpu.memory_space<vmem>>, vector<8x256xf32>
    tpu.vector_store %arg12[%c40, %c0_14], %34 {strides = array<i32>} : memref<200x256xf32, #tpu.memory_space<vmem>>, vector<8x256xf32>,
    %36 = vector.extract_strided_slice %11 {offsets = [0, 211], sizes = [8, 45], strides = [1, 1]} : vector<8x256xf32> to vector<8x45xf32>
    %37 = vector.extract_strided_slice %11 {offsets = [0, 0], sizes = [8, 211], strides = [1, 1]} : vector<8x256xf32> to vector<8x211xf32>
    %38 = tpu.concatenate %36, %37 in 1 : vector<8x45xf32>, vector<8x211xf32> -> vector<8x256xf32>
    %c48 = arith.constant 48 : index
    %c0_15 = arith.constant 0 : index
    %39 = vector.load %arg12[%c48, %c0_15] : memref<200x256xf32, #tpu.memory_space<vmem>>, vector<8x256xf32>
    tpu.vector_store %arg12[%c48, %c0_15], %38 {strides = array<i32>} : memref<200x256xf32, #tpu.memory_space<vmem>>, vector<8x256xf32>,
    %40 = vector.extract_strided_slice %11 {offsets = [0, 221], sizes = [8, 35], strides = [1, 1]} : vector<8x256xf32> to vector<8x35xf32>
    %41 = vector.extract_strided_slice %11 {offsets = [0, 0], sizes = [8, 221], strides = [1, 1]} : vector<8x256xf32> to vector<8x221xf32>
    %42 = tpu.concatenate %40, %41 in 1 : vector<8x35xf32>, vector<8x221xf32> -> vector<8x256xf32>
    %c56 = arith.constant 56 : index
    %c0_16 = arith.constant 0 : index
    %43 = vector.load %arg12[%c56, %c0_16] : memref<200x256xf32, #tpu.memory_space<vmem>>, vector<8x256xf32>
    tpu.vector_store %arg12[%c56, %c0_16], %42 {strides = array<i32>} : memref<200x256xf32, #tpu.memory_space<vmem>>, vector<8x256xf32>,
    %44 = vector.extract_strided_slice %11 {offsets = [0, 222], sizes = [8, 34], strides = [1, 1]} : vector<8x256xf32> to vector<8x34xf32>
    %45 = vector.extract_strided_slice %11 {offsets = [0, 0], sizes = [8, 222], strides = [1, 1]} : vector<8x256xf32> to vector<8x222xf32>
    %46 = tpu.concatenate %44, %45 in 1 : vector<8x34xf32>, vector<8x222xf32> -> vector<8x256xf32>
    %c64 = arith.constant 64 : index
    %c0_17 = arith.constant 0 : index
    %47 = vector.load %arg12[%c64, %c0_17] : memref<200x256xf32, #tpu.memory_space<vmem>>, vector<8x256xf32>
    tpu.vector_store %arg12[%c64, %c0_17], %46 {strides = array<i32>} : memref<200x256xf32, #tpu.memory_space<vmem>>, vector<8x256xf32>,
    %48 = vector.extract_strided_slice %11 {offsets = [0, 223], sizes = [8, 33], strides = [1, 1]} : vector<8x256xf32> to vector<8x33xf32>
    %49 = vector.extract_strided_slice %11 {offsets = [0, 0], sizes = [8, 223], strides = [1, 1]} : vector<8x256xf32> to vector<8x223xf32>
    %50 = tpu.concatenate %48, %49 in 1 : vector<8x33xf32>, vector<8x223xf32> -> vector<8x256xf32>
    %c72 = arith.constant 72 : index
    %c0_18 = arith.constant 0 : index
    %51 = vector.load %arg12[%c72, %c0_18] : memref<200x256xf32, #tpu.memory_space<vmem>>, vector<8x256xf32>
    tpu.vector_store %arg12[%c72, %c0_18], %50 {strides = array<i32>} : memref<200x256xf32, #tpu.memory_space<vmem>>, vector<8x256xf32>,
    %52 = vector.extract_strided_slice %11 {offsets = [0, 224], sizes = [8, 32], strides = [1, 1]} : vector<8x256xf32> to vector<8x32xf32>
    %53 = vector.extract_strided_slice %11 {offsets = [0, 0], sizes = [8, 224], strides = [1, 1]} : vector<8x256xf32> to vector<8x224xf32>
    %54 = tpu.concatenate %52, %53 in 1 : vector<8x32xf32>, vector<8x224xf32> -> vector<8x256xf32>
    %c80 = arith.constant 80 : index
    %c0_19 = arith.constant 0 : index
    %55 = vector.load %arg12[%c80, %c0_19] : memref<200x256xf32, #tpu.memory_space<vmem>>, vector<8x256xf32>
    tpu.vector_store %arg12[%c80, %c0_19], %54 {strides = array<i32>} : memref<200x256xf32, #tpu.memory_space<vmem>>, vector<8x256xf32>,
    %56 = vector.extract_strided_slice %11 {offsets = [0, 225], sizes = [8, 31], strides = [1, 1]} : vector<8x256xf32> to vector<8x31xf32>
    %57 = vector.extract_strided_slice %11 {offsets = [0, 0], sizes = [8, 225], strides = [1, 1]} : vector<8x256xf32> to vector<8x225xf32>
    %58 = tpu.concatenate %56, %57 in 1 : vector<8x31xf32>, vector<8x225xf32> -> vector<8x256xf32>
    %c88 = arith.constant 88 : index
    %c0_20 = arith.constant 0 : index
    %59 = vector.load %arg12[%c88, %c0_20] : memref<200x256xf32, #tpu.memory_space<vmem>>, vector<8x256xf32>
    tpu.vector_store %arg12[%c88, %c0_20], %58 {strides = array<i32>} : memref<200x256xf32, #tpu.memory_space<vmem>>, vector<8x256xf32>,
    %60 = vector.extract_strided_slice %11 {offsets = [0, 226], sizes = [8, 30], strides = [1, 1]} : vector<8x256xf32> to vector<8x30xf32>
    %61 = vector.extract_strided_slice %11 {offsets = [0, 0], sizes = [8, 226], strides = [1, 1]} : vector<8x256xf32> to vector<8x226xf32>
    %62 = tpu.concatenate %60, %61 in 1 : vector<8x30xf32>, vector<8x226xf32> -> vector<8x256xf32>
    %c96 = arith.constant 96 : index
    %c0_21 = arith.constant 0 : index
    %63 = vector.load %arg12[%c96, %c0_21] : memref<200x256xf32, #tpu.memory_space<vmem>>, vector<8x256xf32>
    tpu.vector_store %arg12[%c96, %c0_21], %62 {strides = array<i32>} : memref<200x256xf32, #tpu.memory_space<vmem>>, vector<8x256xf32>,
    %64 = vector.extract_strided_slice %11 {offsets = [0, 227], sizes = [8, 29], strides = [1, 1]} : vector<8x256xf32> to vector<8x29xf32>
    %65 = vector.extract_strided_slice %11 {offsets = [0, 0], sizes = [8, 227], strides = [1, 1]} : vector<8x256xf32> to vector<8x227xf32>
    %66 = tpu.concatenate %64, %65 in 1 : vector<8x29xf32>, vector<8x227xf32> -> vector<8x256xf32>
    %c104 = arith.constant 104 : index
    %c0_22 = arith.constant 0 : index
    %67 = vector.load %arg12[%c104, %c0_22] : memref<200x256xf32, #tpu.memory_space<vmem>>, vector<8x256xf32>
    tpu.vector_store %arg12[%c104, %c0_22], %66 {strides = array<i32>} : memref<200x256xf32, #tpu.memory_space<vmem>>, vector<8x256xf32>,
    %68 = vector.extract_strided_slice %11 {offsets = [0, 237], sizes = [8, 19], strides = [1, 1]} : vector<8x256xf32> to vector<8x19xf32>
    %69 = vector.extract_strided_slice %11 {offsets = [0, 0], sizes = [8, 237], strides = [1, 1]} : vector<8x256xf32> to vector<8x237xf32>
    %70 = tpu.concatenate %68, %69 in 1 : vector<8x19xf32>, vector<8x237xf32> -> vector<8x256xf32>
    %c112 = arith.constant 112 : index
    %c0_23 = arith.constant 0 : index
    %71 = vector.load %arg12[%c112, %c0_23] : memref<200x256xf32, #tpu.memory_space<vmem>>, vector<8x256xf32>
    tpu.vector_store %arg12[%c112, %c0_23], %70 {strides = array<i32>} : memref<200x256xf32, #tpu.memory_space<vmem>>, vector<8x256xf32>,
    %72 = vector.extract_strided_slice %11 {offsets = [0, 238], sizes = [8, 18], strides = [1, 1]} : vector<8x256xf32> to vector<8x18xf32>
    %73 = vector.extract_strided_slice %11 {offsets = [0, 0], sizes = [8, 238], strides = [1, 1]} : vector<8x256xf32> to vector<8x238xf32>
    %74 = tpu.concatenate %72, %73 in 1 : vector<8x18xf32>, vector<8x238xf32> -> vector<8x256xf32>
    %c120 = arith.constant 120 : index
    %c0_24 = arith.constant 0 : index
    %75 = vector.load %arg12[%c120, %c0_24] : memref<200x256xf32, #tpu.memory_space<vmem>>, vector<8x256xf32>
    tpu.vector_store %arg12[%c120, %c0_24], %74 {strides = array<i32>} : memref<200x256xf32, #tpu.memory_space<vmem>>, vector<8x256xf32>,
    %76 = vector.extract_strided_slice %11 {offsets = [0, 239], sizes = [8, 17], strides = [1, 1]} : vector<8x256xf32> to vector<8x17xf32>
    %77 = vector.extract_strided_slice %11 {offsets = [0, 0], sizes = [8, 239], strides = [1, 1]} : vector<8x256xf32> to vector<8x239xf32>
    %78 = tpu.concatenate %76, %77 in 1 : vector<8x17xf32>, vector<8x239xf32> -> vector<8x256xf32>
    %c128 = arith.constant 128 : index
    %c0_25 = arith.constant 0 : index
    %79 = vector.load %arg12[%c128, %c0_25] : memref<200x256xf32, #tpu.memory_space<vmem>>, vector<8x256xf32>
    tpu.vector_store %arg12[%c128, %c0_25], %78 {strides = array<i32>} : memref<200x256xf32, #tpu.memory_space<vmem>>, vector<8x256xf32>,
    %80 = vector.extract_strided_slice %11 {offsets = [0, 240], sizes = [8, 16], strides = [1, 1]} : vector<8x256xf32> to vector<8x16xf32>
    %81 = vector.extract_strided_slice %11 {offsets = [0, 0], sizes = [8, 240], strides = [1, 1]} : vector<8x256xf32> to vector<8x240xf32>
    %82 = tpu.concatenate %80, %81 in 1 : vector<8x16xf32>, vector<8x240xf32> -> vector<8x256xf32>
    %c136 = arith.constant 136 : index
    %c0_26 = arith.constant 0 : index
    %83 = vector.load %arg12[%c136, %c0_26] : memref<200x256xf32, #tpu.memory_space<vmem>>, vector<8x256xf32>
    tpu.vector_store %arg12[%c136, %c0_26], %82 {strides = array<i32>} : memref<200x256xf32, #tpu.memory_space<vmem>>, vector<8x256xf32>,
    %84 = vector.extract_strided_slice %11 {offsets = [0, 241], sizes = [8, 15], strides = [1, 1]} : vector<8x256xf32> to vector<8x15xf32>
    %85 = vector.extract_strided_slice %11 {offsets = [0, 0], sizes = [8, 241], strides = [1, 1]} : vector<8x256xf32> to vector<8x241xf32>
    %86 = tpu.concatenate %84, %85 in 1 : vector<8x15xf32>, vector<8x241xf32> -> vector<8x256xf32>
    %c144 = arith.constant 144 : index
    %c0_27 = arith.constant 0 : index
    %87 = vector.load %arg12[%c144, %c0_27] : memref<200x256xf32, #tpu.memory_space<vmem>>, vector<8x256xf32>
    tpu.vector_store %arg12[%c144, %c0_27], %86 {strides = array<i32>} : memref<200x256xf32, #tpu.memory_space<vmem>>, vector<8x256xf32>,
    %88 = vector.extract_strided_slice %11 {offsets = [0, 242], sizes = [8, 14], strides = [1, 1]} : vector<8x256xf32> to vector<8x14xf32>
    %89 = vector.extract_strided_slice %11 {offsets = [0, 0], sizes = [8, 242], strides = [1, 1]} : vector<8x256xf32> to vector<8x242xf32>
    %90 = tpu.concatenate %88, %89 in 1 : vector<8x14xf32>, vector<8x242xf32> -> vector<8x256xf32>
    %c152 = arith.constant 152 : index
    %c0_28 = arith.constant 0 : index
    %91 = vector.load %arg12[%c152, %c0_28] : memref<200x256xf32, #tpu.memory_space<vmem>>, vector<8x256xf32>
    tpu.vector_store %arg12[%c152, %c0_28], %90 {strides = array<i32>} : memref<200x256xf32, #tpu.memory_space<vmem>>, vector<8x256xf32>,
    %92 = vector.extract_strided_slice %11 {offsets = [0, 243], sizes = [8, 13], strides = [1, 1]} : vector<8x256xf32> to vector<8x13xf32>
    %93 = vector.extract_strided_slice %11 {offsets = [0, 0], sizes = [8, 243], strides = [1, 1]} : vector<8x256xf32> to vector<8x243xf32>
    %94 = tpu.concatenate %92, %93 in 1 : vector<8x13xf32>, vector<8x243xf32> -> vector<8x256xf32>
    %c160 = arith.constant 160 : index
    %c0_29 = arith.constant 0 : index
    %95 = vector.load %arg12[%c160, %c0_29] : memref<200x256xf32, #tpu.memory_space<vmem>>, vector<8x256xf32>
    tpu.vector_store %arg12[%c160, %c0_29], %94 {strides = array<i32>} : memref<200x256xf32, #tpu.memory_space<vmem>>, vector<8x256xf32>,
    %96 = vector.extract_strided_slice %11 {offsets = [0, 253], sizes = [8, 3], strides = [1, 1]} : vector<8x256xf32> to vector<8x3xf32>
    %97 = vector.extract_strided_slice %11 {offsets = [0, 0], sizes = [8, 253], strides = [1, 1]} : vector<8x256xf32> to vector<8x253xf32>
    %98 = tpu.concatenate %96, %97 in 1 : vector<8x3xf32>, vector<8x253xf32> -> vector<8x256xf32>
    %c168 = arith.constant 168 : index
    %c0_30 = arith.constant 0 : index
    %99 = vector.load %arg12[%c168, %c0_30] : memref<200x256xf32, #tpu.memory_space<vmem>>, vector<8x256xf32>
    tpu.vector_store %arg12[%c168, %c0_30], %98 {strides = array<i32>} : memref<200x256xf32, #tpu.memory_space<vmem>>, vector<8x256xf32>,
    %100 = vector.extract_strided_slice %11 {offsets = [0, 254], sizes = [8, 2], strides = [1, 1]} : vector<8x256xf32> to vector<8x2xf32>
    %101 = vector.extract_strided_slice %11 {offsets = [0, 0], sizes = [8, 254], strides = [1, 1]} : vector<8x256xf32> to vector<8x254xf32>
    %102 = tpu.concatenate %100, %101 in 1 : vector<8x2xf32>, vector<8x254xf32> -> vector<8x256xf32>
    %c176 = arith.constant 176 : index
    %c0_31 = arith.constant 0 : index
    %103 = vector.load %arg12[%c176, %c0_31] : memref<200x256xf32, #tpu.memory_space<vmem>>, vector<8x256xf32>
    tpu.vector_store %arg12[%c176, %c0_31], %102 {strides = array<i32>} : memref<200x256xf32, #tpu.memory_space<vmem>>, vector<8x256xf32>,
    %104 = vector.extract_strided_slice %11 {offsets = [0, 255], sizes = [8, 1], strides = [1, 1]} : vector<8x256xf32> to vector<8x1xf32>
    %105 = vector.extract_strided_slice %11 {offsets = [0, 0], sizes = [8, 255], strides = [1, 1]} : vector<8x256xf32> to vector<8x255xf32>
    %106 = tpu.concatenate %104, %105 in 1 : vector<8x1xf32>, vector<8x255xf32> -> vector<8x256xf32>
    %c184 = arith.constant 184 : index
    %c0_32 = arith.constant 0 : index
    %107 = vector.load %arg12[%c184, %c0_32] : memref<200x256xf32, #tpu.memory_space<vmem>>, vector<8x256xf32>
    tpu.vector_store %arg12[%c184, %c0_32], %106 {strides = array<i32>} : memref<200x256xf32, #tpu.memory_space<vmem>>, vector<8x256xf32>,
    %c192 = arith.constant 192 : index
    %c0_33 = arith.constant 0 : index
    %108 = vector.load %arg12[%c192, %c0_33] : memref<200x256xf32, #tpu.memory_space<vmem>>, vector<8x256xf32>
    tpu.vector_store %arg12[%c192, %c0_33], %11 {strides = array<i32>} : memref<200x256xf32, #tpu.memory_space<vmem>>, vector<8x256xf32>,
    %c0_34 = arith.constant 0 : index
    %c0_35 = arith.constant 0 : index
    %109 = vector.load %arg12[%c0_34, %c0_35] : memref<200x256xf32, #tpu.memory_space<vmem>>, vector<200x256xf32>
    %c0_36 = arith.constant 0 : index
    %c0_37 = arith.constant 0 : index
    %110 = vector.load %arg2[%c0_36, %c0_37] : memref<200x256xf32, #tpu.memory_space<vmem>>, vector<200x256xf32>
    %111 = arith.mulf %109, %110 : vector<200x256xf32>
    %112 = arith.truncf %111 : vector<200x256xf32> to vector<200x256xbf16>
    %c0_38 = arith.constant 0 : index
    %c0_39 = arith.constant 0 : index
    %113 = vector.load %arg5[%c0_38, %c0_39] : memref<8x200xbf16, #tpu.memory_space<vmem>>, vector<8x200xbf16>
    %cst_40 = arith.constant dense<0.000000e+00> : vector<8x256xf32>
    %114 = tpu.matmul %113, %112, %cst_40 {dimension_numbers = #tpu.dot_dimension_numbers<[1], [0], [0], [1], [0, 0, 1, 1], [], []>} : vector<8x200xbf16>, vector<200x256xbf16>, vector<8x256xf32> -> vector<8x256xf32>
    %c0_41 = arith.constant 0 : index
    %c0_42 = arith.constant 0 : index
    %115 = vector.load %arg6[%c0_41, %c0_42] : memref<8x1xf32, #tpu.memory_space<vmem>>, vector<8x1xf32>
    %116 = vector.broadcast %115 : vector<8x1xf32> to vector<8x256xf32>
    %117 = arith.addf %114, %116 : vector<8x256xf32>
    %cst_43 = arith.constant 0.000000e+00 : f32
    %118 = vector.broadcast %cst_43 : f32 to vector<8x256xf32>
    %119 = arith.maximumf %117, %118 : vector<8x256xf32>
    %120 = arith.truncf %119 : vector<8x256xf32> to vector<8x256xbf16>
    %c0_44 = arith.constant 0 : index
    %c0_45 = arith.constant 0 : index
    %121 = vector.load %arg7[%c0_44, %c0_45] : memref<8x8xbf16, #tpu.memory_space<vmem>>, vector<8x8xbf16>
    %cst_46 = arith.constant dense<0.000000e+00> : vector<8x256xf32>
    %122 = tpu.matmul %121, %120, %cst_46 {dimension_numbers = #tpu.dot_dimension_numbers<[1], [0], [0], [1], [0, 0, 1, 1], [], []>} : vector<8x8xbf16>, vector<8x256xbf16>, vector<8x256xf32> -> vector<8x256xf32>
    %c0_47 = arith.constant 0 : index
    %c0_48 = arith.constant 0 : index
    %123 = vector.load %arg8[%c0_47, %c0_48] : memref<8x1xf32, #tpu.memory_space<vmem>>, vector<8x1xf32>
    %124 = vector.broadcast %123 : vector<8x1xf32> to vector<8x256xf32>
    %125 = arith.addf %122, %124 : vector<8x256xf32>
    %126 = arith.addf %125, %1 : vector<8x256xf32>
    %cst_49 = arith.constant dense<0.000000e+00> : vector<256xf32>
    %127 = vector.multi_reduction <add>, %126, %cst_49 [0] : vector<8x256xf32> to vector<256xf32>
    %128 = vector.shape_cast %127 : vector<256xf32> to vector<1x256xf32>
    %cst_50 = arith.constant 8.000000e+00 : f32
    %129 = vector.broadcast %cst_50 : f32 to vector<1x256xf32>
    %130 = arith.divf %128, %129 : vector<1x256xf32>
    %131 = vector.broadcast %130 : vector<1x256xf32> to vector<8x256xf32>
    %132 = arith.subf %126, %131 : vector<8x256xf32>
    %133 = arith.mulf %132, %132 : vector<8x256xf32>
    %cst_51 = arith.constant dense<0.000000e+00> : vector<256xf32>
    %134 = vector.multi_reduction <add>, %133, %cst_51 [0] : vector<8x256xf32> to vector<256xf32>
    %135 = vector.shape_cast %134 : vector<256xf32> to vector<1x256xf32>
    %cst_52 = arith.constant 8.000000e+00 : f32
    %136 = vector.broadcast %cst_52 : f32 to vector<1x256xf32>
    %137 = arith.divf %135, %136 : vector<1x256xf32>
    %cst_53 = arith.constant 9.99999974E-6 : f32
    %138 = vector.broadcast %cst_53 : f32 to vector<1x256xf32>
    %139 = arith.addf %137, %138 : vector<1x256xf32>
    %140 = math.rsqrt %139 : vector<1x256xf32>
    %141 = vector.broadcast %140 : vector<1x256xf32> to vector<8x256xf32>
    %142 = arith.mulf %132, %141 : vector<8x256xf32>
    %c0_54 = arith.constant 0 : index
    %c0_55 = arith.constant 0 : index
    %143 = vector.load %arg9[%c0_54, %c0_55] : memref<8x1xf32, #tpu.memory_space<vmem>>, vector<8x1xf32>
    %144 = vector.broadcast %143 : vector<8x1xf32> to vector<8x256xf32>
    %145 = arith.mulf %142, %144 : vector<8x256xf32>
    %c0_56 = arith.constant 0 : index
    %c0_57 = arith.constant 0 : index
    %146 = vector.load %arg10[%c0_56, %c0_57] : memref<8x1xf32, #tpu.memory_space<vmem>>, vector<8x1xf32>
    %147 = vector.broadcast %146 : vector<8x1xf32> to vector<8x256xf32>
    %148 = arith.addf %145, %147 : vector<8x256xf32>
    %c0_58 = arith.constant 0 : index
    %c0_59 = arith.constant 0 : index
    %c0_60 = arith.constant 0 : index
    %149 = vector.load %arg11[%c0_58, %c0_59, %c0_60] : memref<1x8x256xf32, #tpu.memory_space<vmem>>, vector<1x8x256xf32>
    %150 = vector.shape_cast %149 : vector<1x8x256xf32> to vector<8x256xf32>
    %151 = vector.shape_cast %148 : vector<8x256xf32> to vector<1x8x256xf32>
    tpu.vector_store %arg11[%c0_58, %c0_59, %c0_60], %151 {strides = array<i32>} : memref<1x8x256xf32, #tpu.memory_space<vmem>>, vector<1x8x256xf32>,
    return
  }
  func.func @transform_0(%arg0: i32) -> (i32, i32, i32) {
    %c0_i32 = arith.constant 0 : i32
    %c0_i32_0 = arith.constant 0 : i32
    %c0_i32_1 = arith.constant 0 : i32
    return %arg0, %c0_i32, %c0_i32_0 : i32, i32, i32
  }
  func.func @transform_1(%arg0: i32) -> (i32, i32) {
    %c0_i32 = arith.constant 0 : i32
    %c0_i32_0 = arith.constant 0 : i32
    %c0_i32_1 = arith.constant 0 : i32
    return %c0_i32, %c0_i32_0 : i32, i32
  }
  func.func @transform_2(%arg0: i32) -> (i32, i32) {
    %c0_i32 = arith.constant 0 : i32
    %c0_i32_0 = arith.constant 0 : i32
    %c0_i32_1 = arith.constant 0 : i32
    return %c0_i32, %c0_i32_0 : i32, i32
  }
  func.func @transform_3(%arg0: i32) -> (i32, i32) {
    %c0_i32 = arith.constant 0 : i32
    %c0_i32_0 = arith.constant 0 : i32
    %c0_i32_1 = arith.constant 0 : i32
    return %c0_i32, %c0_i32_0 : i32, i32
  }
  func.func @transform_4(%arg0: i32) -> (i32, i32) {
    %c0_i32 = arith.constant 0 : i32
    %c0_i32_0 = arith.constant 0 : i32
    %c0_i32_1 = arith.constant 0 : i32
    return %c0_i32, %c0_i32_0 : i32, i32
  }
  func.func @transform_5(%arg0: i32) -> (i32, i32) {
    %c0_i32 = arith.constant 0 : i32
    %c0_i32_0 = arith.constant 0 : i32
    %c0_i32_1 = arith.constant 0 : i32
    return %c0_i32, %c0_i32_0 : i32, i32
  }
  func.func @transform_6(%arg0: i32) -> (i32, i32) {
    %c0_i32 = arith.constant 0 : i32
    %c0_i32_0 = arith.constant 0 : i32
    %c0_i32_1 = arith.constant 0 : i32
    return %c0_i32, %c0_i32_0 : i32, i32
  }
  func.func @transform_7(%arg0: i32) -> (i32, i32) {
    %c0_i32 = arith.constant 0 : i32
    %c0_i32_0 = arith.constant 0 : i32
    %c0_i32_1 = arith.constant 0 : i32
    return %c0_i32, %c0_i32_0 : i32, i32
  }
  func.func @transform_8(%arg0: i32) -> (i32, i32) {
    %c0_i32 = arith.constant 0 : i32
    %c0_i32_0 = arith.constant 0 : i32
    %c0_i32_1 = arith.constant 0 : i32
    return %c0_i32, %c0_i32_0 : i32, i32
  }
  func.func @transform_9(%arg0: i32) -> (i32, i32) {
    %c0_i32 = arith.constant 0 : i32
    %c0_i32_0 = arith.constant 0 : i32
    %c0_i32_1 = arith.constant 0 : i32
    return %c0_i32, %c0_i32_0 : i32, i32
  }
  func.func @transform_10(%arg0: i32) -> (i32, i32, i32) {
    %c0_i32 = arith.constant 0 : i32
    %c0_i32_0 = arith.constant 0 : i32
    %c0_i32_1 = arith.constant 0 : i32
    return %arg0, %c0_i32, %c0_i32_0 : i32, i32, i32
  }
}

</mosaic_0001>

<bundles_post_ra>
// kernel: tpu_custom_call.1
= control target key start
LH: loop header
LB: loop body
LE: loop exit
PB: predicated region body
PF: predicated region fallthrough
CT: control target
= control target key end

     0   :  { %s1799_s0 = inlined_call_operand.vmem [shape: f32[2,8,256], index: 0, kind: input, shape index: {}]   ;;  %s1800_s1 = inlined_call_operand.hbm [shape: f32[200,256], index: 1, kind: input, shape index: {}]   ;;  %s1801_s2 = inlined_call_operand.vmem [shape: bf16[8,8], index: 2, kind: input, shape index: {}]   ;;  %s1802_s3 = inlined_call_operand.vmem [shape: f32[8,1], index: 3, kind: input, shape index: {}]   ;;  %s1803_s4 = inlined_call_operand.vmem [shape: bf16[8,200], index: 4, kind: input, shape index: {}]   ;;  %s1804_s5 = inlined_call_operand.vmem [shape: f32[8,1], index: 5, kind: input, shape index: {}]   ;;  %s1805_s6 = inlined_call_operand.vmem [shape: bf16[8,8], index: 6, kind: input, shape index: {}]   ;;  %s1806_s7 = inlined_call_operand.vmem [shape: f32[8,1], index: 7, kind: input, shape index: {}]   ;;  %s1807_s8 = inlined_call_operand.vmem [shape: f32[8,1], index: 8, kind: input, shape index: {}]   ;;  %s1808_s9 = inlined_call_operand.vmem [shape: f32[8,1], index: 9, kind: input, shape index: {}]   ;;  %s1809_s10 = inlined_call_operand.hbm [shape: f32[2,8,256], index: 10, kind: output, shape index: {}]  }
   0x1   :  { %1810 = sst [smem:[#allocation9_spill]] %s1799_s0 }
   0x2   :  { %15 = vsyncpa [#allocation4], 0 }
   0x3   :  { %16 = vsyncpa [#allocation5], 0 }
   0x4   :  { %18 = vsyncpa [#allocation5 + $0x1], 0  ;;  %s1464_s13 = smov 0   ;;  %s1466_s14 = smov 0  }
   0x5   :  { %s1468_s15 = smov 0   ;;  %s1470_s16 = smov 0  }
   0x6 LB: > { %s1485_s17 = sadd.s32 4294967295, %s1378_s16   ;;  %s1179_s18 = sadd.s32 4294967294, %s1378_s16   ;;  %s1378_s16 = sphi %s1470_s16, %s1819_s16   ;;  %s1374_s15 = sphi %s1468_s15, %s1818_s15   ;;  %s1370_s14 = sphi %s1466_s14, %s1817_s14   ;;  %s1366_s13 = sphi %s1464_s13, %s1816_s13  }
   0x7   : > { %s1489_s19 = sadd.s32 1, %s1378_s16   ;;  %s246_s20 = sadd.s32 1, %s1374_s15 }
   0x8   : > { %s243_s21 = ssub.s32 %s1378_s16, %s1489_s19  ;;  %p256_p0 = scmp.ne.s32.totalorder %s1374_s15, %s1370_s14 }
   0x9   : > { %p244_p1 = scmp.eq.s32.totalorder %s243_s21, 0  ;;  %p257_p2 = scmp.eq.s32.totalorder %s1485_s17, 1 }
   0xa   : > { %p262_p3 = scmp.ne.s32.totalorder %s1370_s14, %s1366_s13  ;;  %p263_p4 = scmp.eq.s32.totalorder %s1179_s18, 1 }
   0xb   : > { %s1500_s22 = scalar_select %p244_p1, %s1374_s15, %s246_s20  }
   0xc   : > { %p1502_p5 = por %p257_p2, %p256_p0  ;;  %p1506_p6 = por %p263_p4, %p262_p3 }
   0xd   : > { %p1180_p7 = scmp.ge.s32.totalorder %s1378_s16, 1  ;;  %p270_p8 = scmp.lt.s32.totalorder %s1378_s16, 3 }
   0xe   : > { %s1812_s24 = scalar_select %p1506_p6, 1, 0 }
   0xf   : > { %p1217_p9 = scmp.eq.s32.totalorder %s1485_s17, 0  ;;  %p1513_p10 = pnand %p1180_p7, %p270_p8 }
  0x10   : > { %s1380_s26 = smov [#allocation3]  }
  0x11   : > { %s282_s27 = sshll.u32 %s1380_s26, 4  ;;  %p1209_p11 = pneg %p1513_p10  ;;  %s283_s27 = int_to_ptr.vmem [resolvable:$true] %s282_s27 }
  0x12   : > { %s1299_s28 = scalar_lea.vmem %s283_s27, 6400  ;;  %p1307_p3 = scmp.lt.s32.totalorder %s283_s27, %s283_s27 }
  0x13   : > { %p1210_p12 = pnand %p1217_p9, %p1209_p11  ;;  %p1300_p0 = scmp.ne.s32.totalorder %s283_s27, %s1299_s28 }
  0x14   : > { %p1308_p4 = scmp.lt.s32.totalorder %s1299_s28, %s1299_s28 }
  0x15   : > { %p1290_p13 = pneg %p1210_p12 }
  0x16   : > { %p1309_p6 = por %p1308_p4, %p1307_p3 }
  0x17   : > { %p1302_p1 = pnand %p1300_p0, %p1290_p13 }
  0x19   : > { %p1303_p2 = pneg %p1302_p1 }
  0x1b   : > { %p1310_p7 = pnand %p1309_p6, %p1303_p2 }
  0x1d   : > { %1313 = shalt.err (!%p1310_p7)
}
  0x1e   : > { %s1381_s29 = smov 256   ;;  %s1382_s30 = smov 16  }
  0x1f   : > { %1212 = dma.hbm_to_vmem [thread:$0]  (!%p1210_p12), %s1800_s1, 6400, %s283_s27, [#allocation4], %s1381_s29, %s1381_s29, %s1382_s30  }
  0x20   : > { %330 = sbr.rel (%p1513_p10) target bundleno = 938 (0x3aa), region = 60 }
  0x25   : > { %1357 = dma.done.wait (%p1217_p9), [#allocation4], 6400  }
  0x26   : > { %1359 = vsyncadd (%p1217_p9), [#allocation4], 4294960896  ;;  %p368_p8 = scmp.lt.s32.totalorder %s1485_s17, 1  ;;  %v1383_v0 = vmov 0   ;;  %s1814_s0 = sld [smem:[#allocation9_spill]]  ;;  %v381_v5 = vld [vmem:[%s1802_s3] sm:$0xff] }
  0x27   : > { %430 = vmatprep.mubr.bf16.mxu0 %v1383_v0  ;;  %1280 = vset.pattern.permute.xlu0 %v1383_v0  ;;  %vm391_vm0 = vcmask 1043456   ;;  %v380_v9 = vld [vmem:[%s1801_s2] sm:$0xf]  ;;  %vm387_vm1 = vcmask 64512   ;;  %s1384_s11 = smov 18   ;;  %s1385_s12 = smov 19  }
  0x28   : > { %s369_s18 = scalar_select %p368_p8, %s1485_s17, 1  ;;  %1281 = vset.pattern.permute.xlu1 %v1383_v0  ;;  %384 = vperm.xlu0 %1280, %v381_v5   ;;  %v1603_v19 = vld [vmem:[%s1803_s4] sm:$0xff]  ;;  %vm922_vm2 = vcmask 588800   ;;  %vm628_vm3 = vcmask 146432   ;;  %vm604_vm4 = vcmask 236544   ;;  %v813_v47 = vld [vmem:[#allocation3 + $0xf0] sm:$0xff] }
  0x29   : > { %s1388_s21 = smov 32   ;;  %s1389_s26 = smov 31   ;;  %v1191_v20 = vcombine.high %v1603_v19, %v1603_v19  ;;  %v978_v21 = vld [vmem:[%s1806_s7] sm:$0xff]  ;;  %vm592_vm5 = vcmask 244736   ;;  %vm616_vm6 = vcmask 154624   ;;  %v814_v50 = vld [vmem:[#allocation3 + $0xf8] sm:$0xff] }
  0x2a   : > { %s1201_s20 = sshll.u32 %s369_s18, 4  ;;  %s1386_s18 = smov 30   ;;  %v910_v22 = vld [vmem:[%s1804_s5] sm:$0xff]  ;;  %v810_v51 = vld [vmem:[#allocation3 + $0xd8] sm:$0xff]  ;;  %v812_v54 = vld [vmem:[#allocation3 + $0xe8] sm:$0xff]  ;;  %vm568_vm7 = vcmask 261120  }
  0x2b   : > { %s1391_s27 = smov 33   ;;  %s1392_s28 = smov 45   ;;  %1193 = vmatprep.mubr.msk.bf16.mxu1 %vm922_vm2, %v1191_v20  ;;  %v1083_v23 = vld [vmem:[%s1808_s9] sm:$0xff]  ;;  %vm580_vm8 = vcmask 252928   ;;  %v808_v58 = vld [vmem:[#allocation3 + $0xc8] sm:$0xff]  ;;  %v809_v63 = vld [vmem:[#allocation3 + $0xd0] sm:$0xff] }
  0x2c   : > { %s372_s25 = scalar_lea.vmem %s1814_s0, %s1201_s20  ;;  %s1387_s20 = smov 29   ;;  %v1075_v24 = vld [vmem:[%s1807_s8] sm:$0xff]  ;;  %vm556_vm9 = vcmask 269312   ;;  %vm544_vm10 = vcmask 277504   ;;  %vm532_vm11 = vcmask 285696   ;;  %vm520_vm12 = vcmask 367616  }
  0x2d   : > { %v1535_v1 = vld [vmem:[%s372_s25 + $0x8] sm:$0xff]  ;;  %v1537_v2 = vld [vmem:[%s372_s25] sm:$0xff]  ;;  %s1390_s25 = smov 34   ;;  %s1393_s29 = smov 35   ;;  %vm508_vm13 = vcmask 375808   ;;  %vm496_vm14 = vcmask 384000  }
  0x2e   : > { %v377_v3 = vmax.f32 %v1535_v1, 0.0  ;;  %v376_v4 = vmax.f32 %v1537_v2, 0.0  ;;  %s1394_s30 = smov 47   ;;  %v811_v53 = vld [vmem:[#allocation3 + $0xe0] sm:$0xff]  ;;  %vm484_vm15 = vcmask 392192   ;;  %vm472_vm2 = vcmask 400384  }
  0x30   : > { %v379_v6 = vpack.c.bf16 %v377_v3, %v377_v3  ;;  %v378_v7 = vpack.c.bf16 %v376_v4, %v376_v4 }
  0x32   : > { %1188 = vmatprep.subr.msk.bf16.mxu0 %vm391_vm0, %v379_v6  ;;  %v393_v8 = vsel %vm391_vm0, %v378_v7, 0  ;;  %v806_v6 = vld [vmem:[#allocation3 + $0xb8] sm:$0xff] }
  0x33   : > { %413 = vmatpush1.bf16.msra.mxu0 %v393_v8  ;;  %v807_v8 = vld [vmem:[#allocation3 + $0xc0] sm:$0xff] }
  0x36   : > { %1189 = vmatmul.mubr.msk.bf16.vlgmr.msra.gmra.mxu0 %vm387_vm1, %v380_v9 }
  0x37   : > { %1025 = vmatprep.mubr.bf16.mxu0 %v1383_v0 }
  0xa3   : > { %v385_v10 = vpop.permute.xlu0 %384 }
  0xf6   : > { %v432_v11 = vpop.f32.mrf.mxu0 }
  0xf7   : > { %v433_v12 = vadd.f32 %v432_v11, %v385_v10 }
  0xf8   : > { %v434_v13 = vpop.f32.mrf.mxu0 }
  0xf9   : > { %v1550_v14 = vmax.f32 %v433_v12, 0.0  ;;  %v435_v15 = vadd.f32 %v434_v13, %v385_v10 }
  0xfa   : > { %v436_v16 = vpop.f32.mrf.mxu0 }
  0xfb   : > { %626 = vrot.lane.b32.xlu0 %v1550_v14, %s1384_s11  ;;  %614 = vrot.lane.b32.xlu1 %v1550_v14, %s1385_s12  ;;  %v1555_v18 = vmax.f32 %v435_v15, 0.0 }
  0xfc   : > { %v437_v17 = vpop.f32.mrf.mxu0 }
  0xfd   : > { %v804_v17 = vld [vmem:[#allocation3 + $0xa8] sm:$0xff] }
  0xff   : > { %590 = vrot.lane.b32.xlu0 %v1550_v14, %s1386_s18  ;;  %623 = vrot.lane.b32.xlu1 %v1555_v18, %s1384_s11  ;;  %s1395_s11 = smov 46  }
 0x103   : > { %602 = vrot.lane.b32.xlu0 %v1550_v14, %s1387_s20  ;;  %587 = vrot.lane.b32.xlu1 %v1555_v18, %s1386_s18  ;;  %s1396_s18 = smov 49  }
 0x107   : > { %566 = vrot.lane.b32.xlu0 %v1550_v14, %s1388_s21  ;;  %599 = vrot.lane.b32.xlu1 %v1555_v18, %s1387_s20  ;;  %s1397_s20 = smov 48  }
 0x10b   : > { %578 = vrot.lane.b32.xlu0 %v1550_v14, %s1389_s26  ;;  %563 = vrot.lane.b32.xlu1 %v1555_v18, %s1388_s21  ;;  %s1398_s21 = smov 51  }
 0x10f   : > { %542 = vrot.lane.b32.xlu0 %v1550_v14, %s1390_s25  ;;  %575 = vrot.lane.b32.xlu1 %v1555_v18, %s1389_s26  ;;  %s1399_s26 = smov 50  }
 0x113   : > { %554 = vrot.lane.b32.xlu0 %v1550_v14, %s1391_s27  ;;  %539 = vrot.lane.b32.xlu1 %v1555_v18, %s1390_s25  ;;  %s1401_s25 = smov 1  }
 0x117   : > { %518 = vrot.lane.b32.xlu0 %v1550_v14, %s1392_s28  ;;  %551 = vrot.lane.b32.xlu1 %v1555_v18, %s1391_s27  ;;  %s1402_s27 = smov 13  }
 0x11b   : > { %530 = vrot.lane.b32.xlu0 %v1550_v14, %s1393_s29  ;;  %515 = vrot.lane.b32.xlu1 %v1555_v18, %s1392_s28  ;;  %s1403_s28 = smov 3  }
 0x11f   : > { %494 = vrot.lane.b32.xlu0 %v1550_v14, %s1394_s30  ;;  %527 = vrot.lane.b32.xlu1 %v1555_v18, %s1393_s29  ;;  %s1404_s29 = smov 15  }
 0x123   : > { %506 = vrot.lane.b32.xlu0 %v1550_v14, %s1395_s11  ;;  %491 = vrot.lane.b32.xlu1 %v1555_v18, %s1394_s30  ;;  %s1405_s30 = smov 14  }
 0x127   : > { %611 = vrot.lane.b32.xlu0 %v1555_v18, %s1385_s12  ;;  %503 = vrot.lane.b32.xlu1 %v1555_v18, %s1395_s11  ;;  %s1400_s12 = smov 2  }
 0x12b   : > { %470 = vrot.lane.b32.xlu0 %v1550_v14, %s1396_s18  ;;  %467 = vrot.lane.b32.xlu1 %v1555_v18, %s1396_s18 }
 0x12f   : > { %482 = vrot.lane.b32.xlu0 %v1550_v14, %s1397_s20  ;;  %479 = vrot.lane.b32.xlu1 %v1555_v18, %s1397_s20  ;;  %s1406_s20 = smov 17  }
 0x133   : > { %446 = vrot.lane.b32.xlu0 %v1550_v14, %s1398_s21  ;;  %442 = vrot.lane.b32.xlu1 %v1555_v18, %s1398_s21  ;;  %s1407_s21 = smov 16  }
 0x137   : > { %458 = vrot.lane.b32.xlu0 %v1550_v14, %s1399_s26  ;;  %455 = vrot.lane.b32.xlu1 %v1555_v18, %s1399_s26 }
 0x13b   : > { %710 = vrot.lane.b32.xlu0 %v1550_v14, %s1400_s12  ;;  %707 = vrot.lane.b32.xlu1 %v1555_v18, %s1400_s12  ;;  %s1202_s12 = sshll.u32 %s1485_s17, 8 }
 0x13f   : > { %722 = vrot.lane.b32.xlu0 %v1550_v14, %s1401_s25  ;;  %719 = vrot.lane.b32.xlu1 %v1555_v18, %s1401_s25 }
 0x143   : > { %686 = vrot.lane.b32.xlu0 %v1550_v14, %s1402_s27  ;;  %683 = vrot.lane.b32.xlu1 %v1555_v18, %s1402_s27 }
 0x147   : > { %698 = vrot.lane.b32.xlu0 %v1550_v14, %s1403_s28  ;;  %695 = vrot.lane.b32.xlu1 %v1555_v18, %s1403_s28 }
 0x14b   : > { %662 = vrot.lane.b32.xlu0 %v1550_v14, %s1404_s29  ;;  %659 = vrot.lane.b32.xlu1 %v1555_v18, %s1404_s29 }
 0x14f   : > { %674 = vrot.lane.b32.xlu0 %v1550_v14, %s1405_s30  ;;  %671 = vrot.lane.b32.xlu1 %v1555_v18, %s1405_s30  ;;  %s1106_s30 = scalar_lea.hbm %s1809_s10, %s1202_s12 }
 0x153   : > { %638 = vrot.lane.b32.xlu0 %v1550_v14, %s1406_s20  ;;  %635 = vrot.lane.b32.xlu1 %v1555_v18, %s1406_s20  ;;  %s1408_s20 = smov [#allocation6]  }
 0x154   : > { %s1318_s17 = sshll.u32 %s1408_s20, 4  ;;  %s1319_s17 = int_to_ptr.vmem [resolvable:$false] %s1318_s17 }
 0x157   : > { %650 = vrot.lane.b32.xlu0 %v1550_v14, %s1407_s21  ;;  %647 = vrot.lane.b32.xlu1 %v1555_v18, %s1407_s21  ;;  %s365_s21 = sand.u32 1, %s1370_s14  }
 0x158   : > { %s1185_s26 = sshll.u32 %s365_s21, 4  ;;  %s1094_s11 = scalar_lea.sflag [#allocation5], %s365_s21 }
 0x159   : > { %s367_s25 = scalar_lea.vmem [#allocation6], %s1185_s26  ;;  %s1320_s26 = scalar_lea.vmem %s1319_s17, 512 }
 0x15a   : > { %s1108_s27 = sshll.u32 %s367_s25, 4  ;;  %s1109_s27 = int_to_ptr.vmem [resolvable:$true] %s1108_s27 }
 0x15b   : > { %981 = vperm.xlu0 %1280, %v978_v21   ;;  %913 = vperm.xlu1 %1281, %v910_v22   ;;  %v805_v21 = vld [vmem:[#allocation3 + $0xb0] sm:$0xff]  ;;  %s1314_s18 = scalar_lea.vmem %s1109_s27, 256  ;;  %p1321_p11 = scmp.lt.s32.totalorder %s1109_s27, %s1319_s17 }
 0x15c   : > { %p1315_p6 = scmp.ne.s32.totalorder %s1109_s27, %s1314_s18  ;;  %p1322_p12 = scmp.lt.s32.totalorder %s1320_s26, %s1314_s18 }
 0x15e   : > { %p1316_p9 = pnand %p1315_p6, %p1502_p5  ;;  %p1323_p13 = por %p1322_p12, %p1321_p11 }
 0x15f   : > { %1086 = vperm.xlu0 %1280, %v1083_v23   ;;  %1078 = vperm.xlu1 %1281, %v1075_v24  }
 0x160   : > { %p1317_p10 = pneg %p1316_p9 }
 0x162   : > { %p1324_p0 = pnand %p1323_p13, %p1317_p10 }
 0x16d   : > { %v627_v25 = vpop.permute.xlu0 %626  ;;  %v615_v26 = vpop.permute.xlu1 %614 }
 0x171   : > { %v591_v27 = vpop.permute.xlu0 %590  ;;  %v624_v28 = vpop.permute.xlu1 %623 }
 0x172   : > { %v632_v48 = vsel %vm628_vm3, %v624_v28, %v627_v25  ;;  %v629_v49 = vsel %vm628_vm3, %v627_v25, %v624_v28  ;;  %v803_v28 = vld [vmem:[#allocation3 + $0xa0] sm:$0xff]  ;;  %vm460_vm3 = vcmask 408576  }
 0x173   : > { %v863_v55 = vmul.f32 %v813_v47, %v632_v48  ;;  %v864_v62 = vmul.f32 %v814_v50, %v629_v49  ;;  %v800_v47 = vld [vmem:[#allocation3 + $0x88] sm:$0xff]  ;;  %v801_v50 = vld [vmem:[#allocation3 + $0x90] sm:$0xff] }
 0x175   : > { %v603_v29 = vpop.permute.xlu0 %602  ;;  %v588_v30 = vpop.permute.xlu1 %587 }
 0x176   : > { %v593_v59 = vsel %vm592_vm5, %v591_v27, %v588_v30  ;;  %v596_v9 = vsel %vm592_vm5, %v588_v30, %v591_v27  ;;  %vm724_vm5 = vcmask 7168  }
 0x177   : > { %v858_v10 = vmul.f32 %v808_v58, %v593_v59  ;;  %v857_v25 = vmul.f32 %v807_v8, %v596_v9 }
 0x179   : > { %v1623_v31 = vpop.permute.xlu0 %566  ;;  %v600_v32 = vpop.permute.xlu1 %599 }
 0x17a   : > { %v605_v52 = vsel %vm604_vm4, %v603_v29, %v600_v32  ;;  %v608_v0 = vsel %vm604_vm4, %v600_v32, %v603_v29  ;;  %vm448_vm4 = vcmask 416768  }
 0x17b   : > { %v860_v3 = vmul.f32 %v810_v51, %v605_v52  ;;  %v859_v16 = vmul.f32 %v809_v63, %v608_v0  ;;  %v797_v63 = vld [vmem:[#allocation3 + $0x70] sm:$0xff] }
 0x17d   : > { %v579_v33 = vpop.permute.xlu0 %578  ;;  %v1625_v34 = vpop.permute.xlu1 %563  ;;  %v896_v24 = vpack.c.bf16 %v860_v3, %v858_v10  ;;  %v895_v49 = vpack.c.bf16 %v859_v16, %v857_v25  ;;  %v792_v10 = vld [vmem:[#allocation3 + $0x48] sm:$0xff]  ;;  %v793_v16 = vld [vmem:[#allocation3 + $0x50] sm:$0xff] }
 0x17e   : > { %v569_v20 = vsel %vm568_vm7, %v1623_v31, %v1625_v34  ;;  %v572_v29 = vsel %vm568_vm7, %v1625_v34, %v1623_v31  ;;  %vm700_vm7 = vcmask 23552  }
 0x17f   : > { %v854_v30 = vmul.f32 %v804_v17, %v569_v20  ;;  %v853_v52 = vmul.f32 %v803_v28, %v572_v29 }
 0x181   : > { %v1627_v35 = vpop.permute.xlu0 %542  ;;  %v576_v36 = vpop.permute.xlu1 %575 }
 0x182   : > { %v581_v7 = vsel %vm580_vm8, %v579_v33, %v576_v36  ;;  %v584_v22 = vsel %vm580_vm8, %v576_v36, %v579_v33  ;;  %vm688_vm8 = vcmask 105472  }
 0x183   : > { %v856_v23 = vmul.f32 %v806_v6, %v581_v7  ;;  %v855_v36 = vmul.f32 %v805_v21, %v584_v22  ;;  %v795_v6 = vld [vmem:[#allocation3 + $0x60] sm:$0xff]  ;;  %v790_v21 = vld [vmem:[#allocation3 + $0x38] sm:$0xff] }
 0x185   : > { %v1629_v37 = vpop.permute.xlu0 %554  ;;  %v1631_v38 = vpop.permute.xlu1 %539  ;;  %v894_v34 = vpack.c.bf16 %v856_v23, %v854_v30  ;;  %v791_v23 = vld [vmem:[#allocation3 + $0x40] sm:$0xff]  ;;  %v789_v30 = vld [vmem:[#allocation3 + $0x30] sm:$0xff] }
 0x186   : > { %v545_v48 = vsel %vm544_vm10, %v1627_v35, %v1631_v38 }
 0x187   : > { %v850_v58 = vmul.f32 %v800_v47, %v545_v48  ;;  %v786_v48 = vld [vmem:[#allocation3 + $0x18] sm:$0xff] }
 0x189   : > { %v1633_v39 = vpop.permute.xlu0 %518  ;;  %v1635_v40 = vpop.permute.xlu1 %551 }
 0x18a   : > { %v557_v27 = vsel %vm556_vm9, %v1629_v37, %v1635_v40  ;;  %v560_v51 = vsel %vm556_vm9, %v1635_v40, %v1629_v37  ;;  %vm664_vm9 = vcmask 121856  }
 0x18b   : > { %v851_v40 = vmul.f32 %v801_v50, %v560_v51  ;;  %v787_v50 = vld [vmem:[#allocation3 + $0x20] sm:$0xff] }
 0x18d   : > { %v1637_v41 = vpop.permute.xlu0 %530  ;;  %v1639_v42 = vpop.permute.xlu1 %515 }
 0x18e   : > { %v524_v7 = vsel %vm520_vm12, %v1639_v42, %v1633_v39 }
 0x191   : > { %v1641_v43 = vpop.permute.xlu0 %494  ;;  %v1643_v44 = vpop.permute.xlu1 %527 }
 0x192   : > { %v536_v0 = vsel %vm532_vm11, %v1643_v44, %v1637_v41 }
 0x195   : > { %v1645_v45 = vpop.permute.xlu0 %506  ;;  %v1647_v46 = vpop.permute.xlu1 %491 }
 0x199   : > { %v612_v56 = vpop.permute.xlu0 %611  ;;  %v1650_v57 = vpop.permute.xlu1 %503 }
 0x19a   : > { %v617_v60 = vsel %vm616_vm6, %v615_v26, %v612_v56  ;;  %v620_v61 = vsel %vm616_vm6, %v612_v56, %v615_v26  ;;  %v802_v26 = vld [vmem:[#allocation3 + $0x98] sm:$0xff]  ;;  %v548_v56 = vsel %vm544_vm10, %v1631_v38, %v1627_v35  ;;  %v512_v17 = vsel %vm508_vm13, %v1650_v57, %v1645_v45 }
 0x19b   : > { %v861_v4 = vmul.f32 %v811_v53, %v620_v61  ;;  %v862_v5 = vmul.f32 %v812_v54, %v617_v60  ;;  %v852_v31 = vmul.f32 %v802_v26, %v557_v27  ;;  %v798_v53 = vld [vmem:[#allocation3 + $0x78] sm:$0xff]  ;;  %v533_v54 = vsel %vm532_vm11, %v1637_v41, %v1643_v44  ;;  %v796_v60 = vld [vmem:[#allocation3 + $0x68] sm:$0xff] }
 0x19c   : > { %v521_v61 = vsel %vm520_vm12, %v1633_v39, %v1639_v42  ;;  %v848_v35 = vmul.f32 %v798_v53, %v533_v54  ;;  %v847_v44 = vmul.f32 %v797_v63, %v536_v0  ;;  %v845_v42 = vmul.f32 %v795_v6, %v524_v7  ;;  %v788_v27 = vld [vmem:[#allocation3 + $0x28] sm:$0xff] }
 0x19d   : > { %v1656_v11 = vpop.permute.xlu0 %470  ;;  %v1658_v12 = vpop.permute.xlu1 %467  ;;  %v898_v13 = vpack.c.bf16 %v864_v62, %v862_v5  ;;  %v897_v15 = vpack.c.bf16 %v863_v55, %v861_v4  ;;  %v799_v55 = vld [vmem:[#allocation3 + $0x80] sm:$0xff]  ;;  %v893_v62 = vpack.c.bf16 %v855_v36, %v853_v52  ;;  %v892_v38 = vpack.c.bf16 %v852_v31, %v850_v58  ;;  %v794_v4 = vld [vmem:[#allocation3 + $0x58] sm:$0xff]  ;;  %v784_v54 = vld [vmem:[#allocation3 + $0x8] sm:$0xff] }
 0x19e   : > { %v849_v3 = vmul.f32 %v799_v55, %v548_v56  ;;  %v509_v5 = vsel %vm508_vm13, %v1645_v45, %v1650_v57  ;;  %v846_v8 = vmul.f32 %v796_v60, %v521_v61  ;;  %v843_v57 = vmul.f32 %v793_v16, %v512_v17  ;;  %v785_v55 = vld [vmem:[#allocation3 + $0x10] sm:$0xff]  ;;  %v831_v60 = vld [vmem:[#allocation3 + $0x180] sm:$0xff]  ;;  %v826_v17 = vld [vmem:[#allocation3 + $0x158] sm:$0xff] }
 0x19f   : > { %932 = vmatprep.subr.bf16.mxu1 %v898_v13  ;;  %v497_v13 = vsel %vm496_vm14, %v1641_v43, %v1647_v46  ;;  %v844_v20 = vmul.f32 %v794_v4, %v509_v5  ;;  %v473_v28 = vsel %vm472_vm2, %v1656_v11, %v1658_v12  ;;  %v889_v29 = vpack.c.bf16 %v847_v44, %v845_v42 }
 0x1a0   : > { %933 = vmatpush1.bf16.msra.mxu1 %v897_v15  ;;  %v891_v15 = vpack.c.bf16 %v851_v40, %v849_v3  ;;  %v890_v39 = vpack.c.bf16 %v848_v35, %v846_v8  ;;  %v842_v25 = vmul.f32 %v792_v10, %v497_v13  ;;  %v476_v51 = vsel %vm472_vm2, %v1658_v12, %v1656_v11  ;;  %v832_v11 = vld [vmem:[#allocation3 + $0x188] sm:$0xff]  ;;  %v783_v12 = vld [vmem:[#allocation3] sm:$0xff]  ;;  %v830_v8 = vld [vmem:[#allocation3 + $0x178] sm:$0xff] }
 0x1a1   : > { %v1670_v32 = vpop.permute.xlu0 %482  ;;  %934 = vmatprep.subr.bf16.mxu1 %v896_v24  ;;  %v1672_v33 = vpop.permute.xlu1 %479  ;;  %v500_v24 = vsel %vm496_vm14, %v1647_v46, %v1641_v43  ;;  %v838_v31 = vmul.f32 %v788_v27, %v473_v28  ;;  %v837_v61 = vmul.f32 %v787_v50, %v476_v51  ;;  %v881_v4 = vmul.f32 %v831_v60, %v1550_v14  ;;  %v829_v13 = vld [vmem:[#allocation3 + $0x170] sm:$0xff]  ;;  %v820_v51 = vld [vmem:[#allocation3 + $0x128] sm:$0xff] }
 0x1a2   : > { %v485_v22 = vsel %vm484_vm15, %v1670_v32, %v1672_v33  ;;  %v488_v36 = vsel %vm484_vm15, %v1672_v33, %v1670_v32  ;;  %v888_v46 = vpack.c.bf16 %v844_v20, %v842_v25  ;;  %v841_v47 = vmul.f32 %v791_v23, %v500_v24  ;;  %v824_v25 = vld [vmem:[#allocation3 + $0x148] sm:$0xff]  ;;  %v825_v28 = vld [vmem:[#allocation3 + $0x150] sm:$0xff] }
 0x1a3   : > { %v840_v43 = vmul.f32 %v790_v21, %v485_v22  ;;  %v839_v53 = vmul.f32 %v789_v30, %v488_v36  ;;  %vm712_vm6 = vcmask 15360   ;;  %v882_v6 = vmul.f32 %v832_v11, %v1555_v18 }
 0x1a4   : > { %935 = vmatpush1.bf16.msra.mxu1 %v895_v49  ;;  %v887_v33 = vpack.c.bf16 %v843_v57, %v841_v47  ;;  %v907_v14 = vpack.c.bf16 %v881_v4, %v881_v4  ;;  %vm676_vm10 = vcmask 113664   ;;  %vm640_vm11 = vcmask 138240   ;;  %v817_v4 = vld [vmem:[#allocation3 + $0x110] sm:$0xff] }
 0x1a5   : > { %v1686_v59 = vpop.permute.xlu0 %446  ;;  %936 = vmatprep.subr.bf16.mxu1 %v894_v34  ;;  %v1688_v37 = vpop.permute.xlu1 %442  ;;  %v886_v40 = vpack.c.bf16 %v840_v43, %v838_v31  ;;  %v885_v3 = vpack.c.bf16 %v839_v53, %v837_v61  ;;  %v908_v16 = vpack.c.bf16 %v882_v6, %v882_v6  ;;  %v821_v53 = vld [vmem:[#allocation3 + $0x130] sm:$0xff]  ;;  %vm652_vm12 = vcmask 130048  }
 0x1a6   : > { %v449_v32 = vsel %vm448_vm4, %v1686_v59, %v1688_v37  ;;  %v927_v27 = vsel %vm391_vm0, %v907_v14, 0 }
 0x1a7   : > { %v834_v63 = vmul.f32 %v784_v54, %v449_v32 }
 0x1a8   : > { %937 = vmatpush1.bf16.msra.mxu1 %v893_v62  ;;  %v452_v62 = vsel %vm448_vm4, %v1688_v37, %v1686_v59  ;;  %v828_v37 = vld [vmem:[#allocation3 + $0x168] sm:$0xff] }
 0x1a9   : > { %v459_v9 = vpop.permute.xlu0 %458  ;;  %938 = vmatprep.subr.bf16.mxu1 %v892_v38  ;;  %v456_v41 = vpop.permute.xlu1 %455  ;;  %v833_v7 = vmul.f32 %v783_v12, %v452_v62  ;;  %v815_v62 = vld [vmem:[#allocation3 + $0x100] sm:$0xff] }
 0x1aa   : > { %v461_v49 = vsel %vm460_vm3, %v459_v9, %v456_v41  ;;  %v464_v56 = vsel %vm460_vm3, %v456_v41, %v459_v9 }
 0x1ab   : > { %v836_v58 = vmul.f32 %v786_v48, %v461_v49  ;;  %v835_v38 = vmul.f32 %v785_v55, %v464_v56  ;;  %v819_v56 = vld [vmem:[#allocation3 + $0x120] sm:$0xff] }
 0x1ac   : > { %939 = vmatpush1.bf16.msra.mxu1 %v891_v15 }
 0x1ad   : > { %v1714_v26 = vpop.permute.xlu0 %710  ;;  %940 = vmatprep.subr.bf16.mxu1 %v890_v39  ;;  %v1716_v45 = vpop.permute.xlu1 %707  ;;  %v884_v5 = vpack.c.bf16 %v836_v58, %v834_v63  ;;  %v883_v10 = vpack.c.bf16 %v835_v38, %v833_v7  ;;  %v827_v39 = vld [vmem:[#allocation3 + $0x160] sm:$0xff] }
 0x1ae   : > { %v713_v44 = vsel %vm712_vm6, %v1714_v26, %v1716_v45  ;;  %v716_v42 = vsel %vm712_vm6, %v1716_v45, %v1714_v26  ;;  %v822_v26 = vld [vmem:[#allocation3 + $0x138] sm:$0xff]  ;;  %v823_v45 = vld [vmem:[#allocation3 + $0x140] sm:$0xff] }
 0x1af   : > { %v878_v21 = vmul.f32 %v828_v37, %v713_v44  ;;  %v877_v43 = vmul.f32 %v827_v39, %v716_v42 }
 0x1b0   : > { %941 = vmatpush1.bf16.msra.mxu1 %v889_v29 }
 0x1b1   : > { %v723_v34 = vpop.permute.xlu0 %722  ;;  %942 = vmatprep.subr.bf16.mxu1 %v888_v46  ;;  %v720_v52 = vpop.permute.xlu1 %719 }
 0x1b2   : > { %v725_v9 = vsel %vm724_vm5, %v723_v34, %v720_v52  ;;  %v728_v15 = vsel %vm724_vm5, %v720_v52, %v723_v34 }
 0x1b3   : > { %v880_v18 = vmul.f32 %v830_v8, %v725_v9  ;;  %v879_v24 = vmul.f32 %v829_v13, %v728_v15  ;;  %v1190_v15 = vcombine.low %v1603_v19, %v1603_v19  ;;  %v977_v19 = vld [vmem:[%s1805_s6] sm:$0xf] }
 0x1b4   : > { %943 = vmatpush1.bf16.msra.mxu1 %v887_v33 }
 0x1b5   : > { %v687_v0 = vpop.permute.xlu0 %686  ;;  %944 = vmatprep.subr.bf16.mxu1 %v886_v40  ;;  %v684_v35 = vpop.permute.xlu1 %683  ;;  %v906_v36 = vpack.c.bf16 %v880_v18, %v878_v21  ;;  %v905_v52 = vpack.c.bf16 %v879_v24, %v877_v43 }
 0x1b6   : > { %v689_v57 = vsel %vm688_vm8, %v687_v0, %v684_v35  ;;  %v692_v46 = vsel %vm688_vm8, %v684_v35, %v687_v0  ;;  %v816_v35 = vld [vmem:[#allocation3 + $0x108] sm:$0xff] }
 0x1b7   : > { %v874_v47 = vmul.f32 %v824_v25, %v689_v57  ;;  %v873_v55 = vmul.f32 %v823_v45, %v692_v46 }
 0x1b8   : > { %945 = vmatpush1.bf16.msra.mxu1 %v885_v3 }
 0x1b9   : > { %v699_v41 = vpop.permute.xlu0 %698  ;;  %946 = vmatprep.subr.bf16.mxu1 %v884_v5  ;;  %v696_v59 = vpop.permute.xlu1 %695  ;;  %v818_v5 = vld [vmem:[#allocation3 + $0x118] sm:$0xff] }
 0x1ba   : > { %v701_v20 = vsel %vm700_vm7, %v699_v41, %v696_v59  ;;  %v704_v29 = vsel %vm700_vm7, %v696_v59, %v699_v41 }
 0x1bb   : > { %v876_v30 = vmul.f32 %v826_v17, %v701_v20  ;;  %v875_v50 = vmul.f32 %v825_v28, %v704_v29 }
 0x1bc   : > { %947 = vmatpush1.bf16.msra.mxu1 %v883_v10 }
 0x1bd   : > { %v663_v22 = vpop.permute.xlu0 %662  ;;  %1192 = vmatprep.subr.msk.bf16.mxu1 %vm391_vm0, %v908_v16  ;;  %v660_v23 = vpop.permute.xlu1 %659  ;;  %v904_v33 = vpack.c.bf16 %v876_v30, %v874_v47  ;;  %v903_v12 = vpack.c.bf16 %v875_v50, %v873_v55 }
 0x1be   : > { %v665_v31 = vsel %vm664_vm9, %v663_v22, %v660_v23  ;;  %v668_v58 = vsel %vm664_vm9, %v660_v23, %v663_v22 }
 0x1bf   : > { %v870_v40 = vmul.f32 %v820_v51, %v665_v31  ;;  %v869_v0 = vmul.f32 %v819_v56, %v668_v58 }
 0x1c0   : > { %955 = vmatpush2.bf16.msra.mxu1 %v927_v27 }
 0x1c1   : > { %v675_v48 = vpop.permute.xlu0 %674  ;;  %v672_v49 = vpop.permute.xlu1 %671  ;;  %956 = vmatprep.subr.bf16.mxu1 %v906_v36 }
 0x1c2   : > { %v677_v34 = vsel %vm676_vm10, %v675_v48, %v672_v49  ;;  %v680_v54 = vsel %vm676_vm10, %v672_v49, %v675_v48 }
 0x1c3   : > { %v872_v32 = vmul.f32 %v822_v26, %v677_v34  ;;  %v871_v11 = vmul.f32 %v821_v53, %v680_v54 }
 0x1c4   : > { %957 = vmatpush2.bf16.msra.mxu1 %v905_v52 }
 0x1c5   : > { %v639_v60 = vpop.permute.xlu0 %638  ;;  %v636_v61 = vpop.permute.xlu1 %635  ;;  %958 = vmatprep.subr.bf16.mxu1 %v904_v33  ;;  %v902_v63 = vpack.c.bf16 %v872_v32, %v870_v40  ;;  %v901_v41 = vpack.c.bf16 %v871_v11, %v869_v0 }
 0x1c6   : > { %v641_v38 = vsel %vm640_vm11, %v639_v60, %v636_v61  ;;  %v644_v3 = vsel %vm640_vm11, %v636_v61, %v639_v60 }
 0x1c7   : > { %v865_v59 = vmul.f32 %v815_v62, %v644_v3  ;;  %v866_v37 = vmul.f32 %v816_v35, %v641_v38 }
 0x1c8   : > { %959 = vmatpush2.bf16.msra.mxu1 %v903_v12 }
 0x1c9   : > { %v651_v6 = vpop.permute.xlu0 %650  ;;  %v648_v7 = vpop.permute.xlu1 %647  ;;  %960 = vmatprep.subr.bf16.mxu1 %v902_v63 }
 0x1ca   : > { %v653_v8 = vsel %vm652_vm12, %v651_v6, %v648_v7  ;;  %v656_v9 = vsel %vm652_vm12, %v648_v7, %v651_v6 }
 0x1cb   : > { %v867_v44 = vmul.f32 %v817_v4, %v656_v9  ;;  %v868_v10 = vmul.f32 %v818_v5, %v653_v8 }
 0x1cc   : > { %961 = vmatpush2.bf16.msra.mxu1 %v901_v41 }
 0x1cd   : > { %v900_v14 = vpack.c.bf16 %v868_v10, %v866_v37  ;;  %v899_v13 = vpack.c.bf16 %v867_v44, %v865_v59 }
 0x1cf   : > { %962 = vmatprep.subr.bf16.mxu1 %v900_v14 }
 0x1d0   : > { %963 = vmatpush2.bf16.msra.mxu1 %v899_v13 }
 0x1d3   : > { %965 = vmatmul.mubr.bf16.vlgmr.msra.gmra.mxu1 %v1190_v15 }
 0x1d6   : > { %v914_v18 = vpop.permute.xlu1 %913  ;;  %v982_v27 = vpop.permute.xlu0 %981 }
 0x1da   : > { %v1079_v44 = vpop.permute.xlu1 %1078  ;;  %v1087_v13 = vpop.permute.xlu0 %1086 }
 0x293   : > { %v966_v16 = vpop.f32.mrf.mxu1 }
 0x294   : > { %v967_v17 = vadd.f32 %v966_v16, %v914_v18 }
 0x295   : > { %v968_v20 = vpop.f32.mrf.mxu1 }
 0x296   : > { %v973_v39 = vmax.f32 %v967_v17, 0.0  ;;  %v969_v42 = vadd.f32 %v968_v20, %v914_v18 }
 0x297   : > { %v970_v21 = vpop.f32.mrf.mxu1 }
 0x298   : > { %v975_v22 = vpack.c.bf16 %v973_v39, %v973_v39  ;;  %v974_v23 = vmax.f32 %v969_v42, 0.0 }
 0x299   : > { %v971_v24 = vpop.f32.mrf.mxu1 }
 0x29a   : > { %v976_v25 = vpack.c.bf16 %v974_v23, %v974_v23  ;;  %v988_v57 = vsel %vm391_vm0, %v975_v22, 0 }
 0x29c   : > { %1194 = vmatprep.subr.msk.bf16.mxu0 %vm391_vm0, %v976_v25 }
 0x29d   : > { %1008 = vmatpush1.bf16.msra.mxu0 %v988_v57 }
 0x2a0   : > { %1195 = vmatmul.mubr.msk.bf16.vlgmr.msra.gmra.mxu0 %vm387_vm1, %v977_v19 }
 0x360   : > { %v1027_v28 = vpop.f32.mrf.mxu0 }
 0x361   : > { %v1028_v29 = vadd.f32 %v1027_v28, %v982_v27 }
 0x362   : > { %v1029_v30 = vpop.f32.mrf.mxu0 }
 0x363   : > { %v1034_v36 = vadd.f32 %v1028_v29, %v1537_v2  ;;  %v1030_v43 = vadd.f32 %v1029_v30, %v982_v27 }
 0x364   : > { %v1031_v26 = vpop.f32.mrf.mxu0 }
 0x365   : > { %v1036_v45 = vrot.slane %v1034_v36, 4  ;;  %v1035_v46 = vadd.f32 %v1030_v43, %v1535_v1 }
 0x366   : > { %v1032_v47 = vpop.f32.mrf.mxu0 }
 0x367   : > { %v1037_v48 = vadd.f32 %v1036_v45, %v1034_v36  ;;  %v1042_v49 = vrot.slane %v1035_v46, 4 }
 0x369   : > { %v1038_v50 = vrot.slane %v1037_v48, 2  ;;  %v1043_v51 = vadd.f32 %v1042_v49, %v1035_v46 }
 0x36b   : > { %v1039_v31 = vadd.f32 %v1038_v50, %v1037_v48  ;;  %v1044_v34 = vrot.slane %v1043_v51, 2 }
 0x36d   : > { %v1040_v52 = vrot.slane %v1039_v31, 1  ;;  %v1045_v53 = vadd.f32 %v1044_v34, %v1043_v51 }
 0x36f   : > { %v1041_v54 = vadd.f32 %v1040_v52, %v1039_v31  ;;  %v1046_v32 = vrot.slane %v1045_v53, 1 }
 0x371   : > { %v1049_v33 = vmul.f32 0.125, %v1041_v54  ;;  %v1047_v55 = vadd.f32 %v1046_v32, %v1045_v53 }
 0x373   : > { %v1051_v56 = vsub.f32 %v1034_v36, %v1049_v33  ;;  %v1050_v2 = vmul.f32 0.125, %v1047_v55 }
 0x375   : > { %v1053_v58 = vmul.f32 %v1051_v56, %v1051_v56  ;;  %v1052_v40 = vsub.f32 %v1035_v46, %v1050_v2 }
 0x377   : > { %v1055_v60 = vrot.slane %v1053_v58, 4  ;;  %v1054_v61 = vmul.f32 %v1052_v40, %v1052_v40 }
 0x379   : > { %v1056_v1 = vadd.f32 %v1055_v60, %v1053_v58  ;;  %v1061_v11 = vrot.slane %v1054_v61, 4 }
 0x37b   : > { %v1057_v12 = vrot.slane %v1056_v1, 2  ;;  %v1062_v62 = vadd.f32 %v1061_v11, %v1054_v61 }
 0x37d   : > { %v1058_v63 = vadd.f32 %v1057_v12, %v1056_v1  ;;  %v1063_v0 = vrot.slane %v1062_v62, 2 }
 0x37f   : > { %v1059_v35 = vrot.slane %v1058_v63, 1  ;;  %v1064_v38 = vadd.f32 %v1063_v0, %v1062_v62 }
 0x381   : > { %v1060_v3 = vadd.f32 %v1059_v35, %v1058_v63  ;;  %v1065_v4 = vrot.slane %v1064_v38, 1 }
 0x383   : > { %v1067_v5 = vmul.f32 0.125, %v1060_v3  ;;  %v1066_v6 = vadd.f32 %v1065_v4, %v1064_v38 }
 0x385   : > { %v1069_v7 = vadd.f32 1e-05, %v1067_v5  ;;  %v1068_v8 = vmul.f32 0.125, %v1066_v6 }
 0x387   : > { %1284 = vrsqrt.f32 %v1069_v7  ;;  %v1070_v9 = vadd.f32 1e-05, %v1068_v8 }
 0x389   : > { %1286 = vrsqrt.f32 %v1070_v9 }
 0x394   : > { %v1285_v41 = vpop.eup %1284 }
 0x395   : > { %v1073_v59 = vmul.f32 %v1285_v41, %v1051_v56 }
 0x396   : > { %v1287_v37 = vpop.eup %1286 }
 0x397   : > { %v1081_v10 = vmul.f32 %v1079_v44, %v1073_v59  ;;  %v1074_v14 = vmul.f32 %v1287_v37, %v1052_v40 }
 0x399   : > { %v1082_v15 = vmul.f32 %v1079_v44, %v1074_v14  ;;  %v1089_v18 = vadd.f32 %v1087_v13, %v1081_v10 }
 0x39b   : > { %v1090_v16 = vadd.f32 %v1087_v13, %v1082_v15  ;;  %1091 = vst [vmem:[%s367_s25] sm:$0xff] %v1089_v18 }
 0x39d   : > { %1092 = vst [vmem:[%s367_s25 + $0x8] sm:$0xff] %v1090_v16 }
 0x39e   : > { %1327 = shalt.err (!%p1324_p0)
}
 0x39f   : > { %s1328_s0 = scalar_lea.hbm %s1106_s30, 256  ;;  %s1332_s25 = scalar_lea.hbm %s1809_s10, 512 }
 0x3a0   : > { %p1329_p1 = scmp.ne.s32.totalorder %s1106_s30, %s1328_s0  ;;  %p1333_p4 = scmp.lt.s32.totalorder %s1106_s30, %s1809_s10 }
 0x3a1   : > { %p1334_p7 = scmp.lt.s32.totalorder %s1332_s25, %s1328_s0 }
 0x3a2   : > { %p1330_p2 = pnand %p1329_p1, %p1502_p5 }
 0x3a3   : > { %p1335_p8 = por %p1334_p7, %p1333_p4 }
 0x3a4   : > { %p1331_p3 = pneg %p1330_p2 }
 0x3a6   : > { %p1336_p6 = pnand %p1335_p8, %p1331_p3 }
 0x3a8   : > { %1339 = shalt.err (!%p1336_p6)
}
 0x3a9   : > { %1207 = dma.vmem_to_hbm [thread:$0]  (%p1502_p5), %s1109_s27, 256, %s1106_s30, %s1094_s11  }
 0x3aa PF: > { %p1219_p9 = scmp.ge.s32.totalorder %s1378_s16, 2  ;;  %s1120_s18 = sand.u32 1, %s1366_s13  }
 0x3ab   : > { %p1815_p10 = scmp.ne.s32.totalorder %s1812_s24, 0  ;;  %s1121_s20 = scalar_lea.sflag [#allocation5], %s1120_s18 }
 0x3ad   : > { %p1214_p11 = pnand %p1219_p9, %p1815_p10 }
 0x3af   : > { %p1215_p12 = pneg %p1214_p11 }
 0x3b1   : > { %1361 = dma.done.wait (%p1215_p12), %s1121_s20, 256  }
 0x3b2   : > { %1363 = vsyncadd (%p1215_p12), %s1121_s20, 4294967040  ;;  %p21_p13 = scmp.ge.s32.totalorder %s1489_s19, 4   ;;  %s1816_s13 = smov %s1370_s14 }
 0x3b3   : > { %s1817_s14 = smov %s1374_s15  ;;  %s1818_s15 = smov %s1500_s22 }
 0x3b4   : > { %s1819_s16 = smov %s1489_s19  ;;  %23 = sbr.rel (!%p21_p13) target bundleno = 6 (0x6), region = 100 }
 0x3b9   :  { %1126 = vsyncpa [#allocation4], 1 }
 0x3ba   :  { %1128 = vsyncpa [#allocation4 + $0x1], 1 }
 0x3bb   :  { %1129 = vsyncpa [#allocation5], 1 }
 0x3bc   :  { %1131 = vsyncpa [#allocation5 + $0x1], 1 }

</bundles_post_ra>
